<compile_context>
chip_gen: v7x
topology: tpu7x:2x2x1
jax: 0.10.0
libtpu: 0.0.40
codegen_flags: <defaults>
</compile_context>

<pallas_src>
import functools

import jax
import jax.numpy as jnp
from jax.experimental import pallas as pl
from jax.experimental.pallas import tpu as pltpu


def _pool_kernel(x_ref, out_ref, max_acc, sum_acc, *, rem, tile_hw):
    """Accumulate per-row max and sum over the HW (lane) axis."""
    k = pl.program_id(1)
    nk = pl.num_programs(1)

    @pl.when(k == 0)
    def _():
        max_acc[...] = jnp.full_like(max_acc, -jnp.inf)
        sum_acc[...] = jnp.zeros_like(sum_acc)

    x = x_ref[...]

    def accumulate(x_max, x_sum):
        # Max reduce in the native float dtype (exact for bf16/f32); cast only
        # the tiny (tile_r, 1) result.  Sum accumulates in f32.
        max_acc[...] = jnp.maximum(
            max_acc[...],
            jnp.max(x_max, axis=-1, keepdims=True).astype(jnp.float32))
        sum_acc[...] = sum_acc[...] + jnp.sum(
            x_sum.astype(jnp.float32), axis=-1, keepdims=True)

    if rem:
        # HW does not divide evenly into tile_hw: only the *final* HW block
        # has lanes past the true spatial extent.  Interior steps stay
        # mask-free (no iota / compare / select work on the hot path).
        @pl.when(k < nk - 1)
        def _():
            accumulate(x, x)

        @pl.when(k == nk - 1)
        def _():
            lane = jax.lax.broadcasted_iota(jnp.int32, (1, tile_hw), 1)
            valid = lane < rem                    # compile-time-constant mask
            neg_inf = jnp.array(-jnp.inf, dtype=x.dtype)
            zero = jnp.array(0, dtype=x.dtype)
            accumulate(jnp.where(valid, x, neg_inf),
                       jnp.where(valid, x, zero))
    else:
        accumulate(x, x)

    @pl.when(k == nk - 1)
    def _():
        out_ref[...] = jnp.concatenate([max_acc[...], sum_acc[...]], axis=-1)


def cls_layer_forward(x):
    """x: (N, C, H, W) -> (max_pool, avg_pool), each (N, C, 1, 1)."""
    N, C, H, W = x.shape
    if not jnp.issubdtype(x.dtype, jnp.floating):
        # TODO(synk): integer inputs are not meaningful for an avg-pool; cast.
        x = x.astype(jnp.float32)

    rows = N * C
    hw = H * W
    itemsize = jnp.dtype(x.dtype).itemsize
    row_align = max(8, 32 // itemsize)       # sublane multiple: 8 f32 / 16 bf16

    # --- Fold part of HW into the row axis when N*C alone cannot provide >=2
    # row tiles (keeps both v7x TensorCores busy); the reshape is free, and
    # the `split` partials per channel are combined in the wrapper.
    split = 1
    while (rows * split < 2 * row_align
           and hw % (split * 2) == 0
           and hw // (split * 2) >= 128):
        split *= 2
    rows_eff = rows * split
    hw_eff = hw // split

    # --- Row tiling: multiple of the sublane alignment, <= 256, preferring
    # >= 2 tiles so the "parallel" grid axis can be split across cores.
    if rows_eff <= row_align:
        tile_r = rows_eff                        # single full-extent tile
    else:
        half = (rows_eff // 2) // row_align * row_align
        tile_r = max(row_align,
                     min(256, half if half >= row_align else row_align))

    # --- HW tiling: bound the per-step input block (~8 MiB f32 / ~4 MiB bf16);
    # amortizes per-step overhead on v7x while the double-buffered footprint
    # plus in-kernel temporaries stay comfortably inside VMEM everywhere.
    byte_budget = 8 * 1024 * 1024 if itemsize >= 4 else 4 * 1024 * 1024
    tile_hw_cap = max(128, (byte_budget // (tile_r * itemsize)) // 128 * 128)
    if hw_eff <= 128:
        tile_hw = hw_eff                         # full extent (always legal)
    else:
        tile_hw = min(((hw_eff + 127) // 128) * 128, tile_hw_cap)
    rem = hw_eff % tile_hw                       # valid lanes in last HW block

    x2d = x.reshape(rows_eff, hw_eff)            # free reshape, NO jnp.pad
    grid = (pl.cdiv(rows_eff, tile_r), pl.cdiv(hw_eff, tile_hw))

    kernel = functools.partial(_pool_kernel, rem=rem, tile_hw=tile_hw)

    out = pl.pallas_call(
        kernel,
        out_shape=jax.ShapeDtypeStruct((rows_eff, 2), jnp.float32),
        grid_spec=pltpu.PrefetchScalarGridSpec(
            num_scalar_prefetch=0,
            grid=grid,
            in_specs=[pl.BlockSpec((tile_r, tile_hw), lambda i, k: (i, k))],
            out_specs=pl.BlockSpec((tile_r, 2), lambda i, k: (i, 0)),
            scratch_shapes=[
                pltpu.VMEM((tile_r, 1), jnp.float32),   # running max
                pltpu.VMEM((tile_r, 1), jnp.float32),   # running sum
            ],
        ),
        compiler_params=pltpu.CompilerParams(
            dimension_semantics=("parallel", "arbitrary"),
            vmem_limit_bytes=48 * 1024 * 1024,
        ),
    )(x2d)

    mx = out[:, 0]                               # (rows_eff,)
    sm = out[:, 1]
    if split > 1:                                # combine folded HW partials
        mx = jnp.max(mx.reshape(rows, split), axis=1)
        sm = jnp.sum(sm.reshape(rows, split), axis=1)
    max_pooled = mx.reshape(N, C, 1, 1).astype(x.dtype)
    avg_pooled = (sm * (1.0 / hw)).reshape(N, C, 1, 1).astype(x.dtype)
    return max_pooled, avg_pooled


if __name__ == "__main__":
    key = jax.random.PRNGKey(0)
    N, C, H, W = 2, 4, 16, 16
    x = jax.random.normal(key, (N, C, H, W), dtype=jnp.float32)

    max_pooled, avg_pooled = cls_layer_forward(x)
    jax.block_until_ready((max_pooled, avg_pooled))

    # Sanity check against plain JAX reference (global adaptive pooling).
    ref_max = jnp.max(x, axis=(2, 3), keepdims=True)
    ref_avg = jnp.mean(x, axis=(2, 3), keepdims=True)
    assert jnp.allclose(max_pooled, ref_max, atol=1e-6), "max pool mismatch"
    assert jnp.allclose(avg_pooled, ref_avg, atol=1e-5), "avg pool mismatch"

    print("KERNEL_OK")
</pallas_src>

<mosaic_0001>
module attributes {stable_mosaic.version = 11 : i64} {
  func.func @_pool_kernel(%arg0: i32, %arg1: i32, %arg2: memref<8x128xf32, #tpu.memory_space<vmem>>, %arg3: memref<8x2xf32, #tpu.memory_space<vmem>>, %arg4: memref<8x1xf32, #tpu.memory_space<vmem>>, %arg5: memref<8x1xf32, #tpu.memory_space<vmem>>) attributes {dimension_semantics = [#tpu.dimension_semantics<parallel>, #tpu.dimension_semantics<arbitrary>], iteration_bounds = array<i64: 2, 1>, scalar_prefetch = 0 : i64, scratch_operands = 2 : i64, tpu.core_type = #tpu.core_type<tc>, window_params = [{transform_indices = @transform_0, window_bounds = array<i64: 8, 128>}, {transform_indices = @transform_1, window_bounds = array<i64: 8, 2>}]} {
    %c0_i32 = arith.constant 0 : i32
    %0 = arith.cmpi eq, %arg1, %c0_i32 : i32
    %1 = arith.extui %0 : i1 to i32
    %c0_i32_0 = arith.constant 0 : i32
    %2 = arith.cmpi ne, %1, %c0_i32_0 : i32
    scf.if %2 {
      %cst_13 = arith.constant 0xFF800000 : f32
      %17 = vector.broadcast %cst_13 : f32 to vector<8x1xf32>
      %c0_14 = arith.constant 0 : index
      %c0_15 = arith.constant 0 : index
      %18 = vector.load %arg4[%c0_14, %c0_15] : memref<8x1xf32, #tpu.memory_space<vmem>>, vector<8x1xf32>
      tpu.vector_store %arg4[%c0_14, %c0_15], %17 {strides = array<i32>} : memref<8x1xf32, #tpu.memory_space<vmem>>, vector<8x1xf32>,
      %cst_16 = arith.constant 0.000000e+00 : f32
      %19 = vector.broadcast %cst_16 : f32 to vector<8x1xf32>
      %c0_17 = arith.constant 0 : index
      %c0_18 = arith.constant 0 : index
      %20 = vector.load %arg5[%c0_17, %c0_18] : memref<8x1xf32, #tpu.memory_space<vmem>>, vector<8x1xf32>
      tpu.vector_store %arg5[%c0_17, %c0_18], %19 {strides = array<i32>} : memref<8x1xf32, #tpu.memory_space<vmem>>, vector<8x1xf32>,
    } else {
    }
    %c0 = arith.constant 0 : index
    %c0_1 = arith.constant 0 : index
    %3 = vector.load %arg2[%c0, %c0_1] : memref<8x128xf32, #tpu.memory_space<vmem>>, vector<8x128xf32>
    %c0_2 = arith.constant 0 : index
    %c0_3 = arith.constant 0 : index
    %4 = vector.load %arg4[%c0_2, %c0_3] : memref<8x1xf32, #tpu.memory_space<vmem>>, vector<8x1xf32>
    %cst = arith.constant dense<0xFF800000> : vector<8xf32>
    %5 = vector.multi_reduction <maximumf>, %3, %cst [1] : vector<8x128xf32> to vector<8xf32>
    %6 = vector.shape_cast %5 : vector<8xf32> to vector<8x1xf32>
    %7 = arith.maximumf %4, %6 : vector<8x1xf32>
    %c0_4 = arith.constant 0 : index
    %c0_5 = arith.constant 0 : index
    %8 = vector.load %arg4[%c0_4, %c0_5] : memref<8x1xf32, #tpu.memory_space<vmem>>, vector<8x1xf32>
    tpu.vector_store %arg4[%c0_4, %c0_5], %7 {strides = array<i32>} : memref<8x1xf32, #tpu.memory_space<vmem>>, vector<8x1xf32>,
    %c0_6 = arith.constant 0 : index
    %c0_7 = arith.constant 0 : index
    %9 = vector.load %arg5[%c0_6, %c0_7] : memref<8x1xf32, #tpu.memory_space<vmem>>, vector<8x1xf32>
    %cst_8 = arith.constant dense<0.000000e+00> : vector<8xf32>
    %10 = vector.multi_reduction <add>, %3, %cst_8 [1] : vector<8x128xf32> to vector<8xf32>
    %11 = vector.shape_cast %10 : vector<8xf32> to vector<8x1xf32>
    %12 = arith.addf %9, %11 : vector<8x1xf32>
    %c0_9 = arith.constant 0 : index
    %c0_10 = arith.constant 0 : index
    %13 = vector.load %arg5[%c0_9, %c0_10] : memref<8x1xf32, #tpu.memory_space<vmem>>, vector<8x1xf32>
    tpu.vector_store %arg5[%c0_9, %c0_10], %12 {strides = array<i32>} : memref<8x1xf32, #tpu.memory_space<vmem>>, vector<8x1xf32>,
    %c0_i32_11 = arith.constant 0 : i32
    %14 = arith.cmpi eq, %arg1, %c0_i32_11 : i32
    %15 = arith.extui %14 : i1 to i32
    %c0_i32_12 = arith.constant 0 : i32
    %16 = arith.cmpi ne, %15, %c0_i32_12 : i32
    scf.if %16 {
      %c0_13 = arith.constant 0 : index
      %c0_14 = arith.constant 0 : index
      %17 = vector.load %arg4[%c0_13, %c0_14] : memref<8x1xf32, #tpu.memory_space<vmem>>, vector<8x1xf32>
      %c0_15 = arith.constant 0 : index
      %c0_16 = arith.constant 0 : index
      %18 = vector.load %arg5[%c0_15, %c0_16] : memref<8x1xf32, #tpu.memory_space<vmem>>, vector<8x1xf32>
      %19 = tpu.concatenate %17, %18 in 1 : vector<8x1xf32>, vector<8x1xf32> -> vector<8x2xf32>
      %c0_17 = arith.constant 0 : index
      %c0_18 = arith.constant 0 : index
      %20 = vector.load %arg3[%c0_17, %c0_18] : memref<8x2xf32, #tpu.memory_space<vmem>>, vector<8x2xf32>
      tpu.vector_store %arg3[%c0_17, %c0_18], %19 {strides = array<i32>} : memref<8x2xf32, #tpu.memory_space<vmem>>, vector<8x2xf32>,
    } else {
    }
    return
  }
  func.func @transform_0(%arg0: i32, %arg1: i32) -> (i32, i32) {
    %c0_i32 = arith.constant 0 : i32
    return %arg0, %arg1 : i32, i32
  }
  func.func @transform_1(%arg0: i32, %arg1: i32) -> (i32, i32) {
    %c0_i32 = arith.constant 0 : i32
    %c0_i32_0 = arith.constant 0 : i32
    return %arg0, %c0_i32 : i32, i32
  }
}

</mosaic_0001>

<bundles_post_ra>
// kernel: tpu_custom_call.1
= control target key start
LH: loop header
LB: loop body
LE: loop exit
PB: predicated region body
PF: predicated region fallthrough
CT: control target
= control target key end

     0   :  { %6 = vsyncpa [#allocation5], 0  ;;  %s547_s0 = inlined_call_operand.hbm [shape: f32[16,128], index: 0, kind: input, shape index: {}]   ;;  %s548_s1 = inlined_call_operand.vmem [shape: f32[16,2], index: 1, kind: output, shape index: {}]  }
   0x1   :  { %8 = vsyncpa [#allocation5 + $0x1], 0  ;;  %s417_s6 = smov 0   ;;  %s419_s7 = smov 0  }
   0x2   :  { %s421_s8 = smov 0   ;;  %s423_s9 = smov 0  }
   0x3   :  { %s425_s10 = smov 0   ;;  %s427_s11 = smov 0  }
   0x4 LB: > { %s252_s12 = sadd.s32 4294967295, %s401_s11   ;;  %s26_s13 = sadd.s32 1, %s397_s10  ;;  %s401_s11 = sphi %s427_s11, %s14_s11   ;;  %s397_s10 = sphi %s425_s10, %s558_s10   ;;  %s393_s9 = sphi %s423_s9, %s557_s9   ;;  %s389_s8 = sphi %s421_s8, %s556_s8   ;;  %s385_s7 = sphi %s419_s7, %s555_s7   ;;  %s381_s6 = sphi %s417_s6, %s554_s6  }
   0x5   : > { %p28_p0 = scmp.ge.s32.totalorder %s26_s13, 2  ;;  %s35_s14 = sadd.s32 1, %s389_s8 }
   0x6   : > { %p42_p1 = scmp.ne.s32.totalorder %s389_s8, %s385_s7  ;;  %p43_p2 = scmp.eq.s32.totalorder %s401_s11, 0 }
   0x7   : > { %s560_s13 = smov (%p28_p0, %s26_s13), 0  ;;  %p48_p4 = scmp.ne.s32.totalorder %s385_s7, %s381_s6 }
   0x8   : > { %p453_p3 = por %p43_p2, %p42_p1  ;;  %s30_s16 = ssub.s32 %s397_s10, %s560_s13 }
   0x9   : > { %p49_p5 = scmp.eq.s32.totalorder %s252_s12, 0  ;;  %p33_p6 = scmp.eq.s32.totalorder %s30_s16, 0 }
   0xa   : > { %p269_p8 = scmp.lt.s32.totalorder %s401_s11, 2  ;;  %s98_s19 = sand.u32 1, %s389_s8  }
   0xb   : > { %p460_p7 = por %p49_p5, %p48_p4  ;;  %s257_s20 = sshll.u32 %s397_s10, 7 }
   0xc   : > { %s466_s18 = scalar_select %p33_p6, %s389_s8, %s35_s14  }
   0xd   : > { %s256_s21 = sshll.u32 %s98_s19, 3  ;;  %s473_s24 = scalar_lea.hbm %s547_s0, %s257_s20 }
   0xe   : > { %s102_s25 = scalar_lea.vmem [#allocation4], %s256_s21  ;;  %p477_p9 = pnand %p269_p8, %p453_p3 }
   0xf   : > { %s110_s26 = sshll.u32 %s102_s25, 4  ;;  %s99_s28 = scalar_lea.sflag [#allocation5], %s98_s19  ;;  %s481_s26 = int_to_ptr.vmem [resolvable:$true] %s110_s26 }
  0x10   : > { %s321_s29 = scalar_lea.hbm %s473_s24, 128  ;;  %p323_p13 = pneg %p477_p9 }
  0x11   : > { %p322_p12 = scmp.ne.s32.totalorder %s473_s24, %s321_s29  ;;  %s326_s3 = scalar_lea.hbm %s547_s0, 256 }
  0x12   : > { %p327_p2 = scmp.lt.u32.totalorder %s473_s24, %s547_s0  ;;  %p328_p3 = scmp.lt.u32.totalorder %s326_s3, %s321_s29 }
  0x13   : > { %p324_p0 = pnand %p323_p13, %p322_p12  ;;  %p330_p5 = scmp.lt.u32.totalorder %s321_s29, %s473_s24 }
  0x14   : > { %p329_p4 = por %p328_p3, %p327_p2 }
  0x15   : > { %p325_p1 = pneg %p324_p0 }
  0x16   : > { %p331_p6 = por %p330_p5, %p329_p4 }
  0x18   : > { %p332_p8 = pnand %p331_p6, %p325_p1 }
  0x1a   : > { %335 = shalt.err (!%p332_p8)
}
  0x1b   : > { %s336_s6 = scalar_lea.vmem %s481_s26, 128  ;;  %s403_s12 = smov [#allocation4]  }
  0x1c   : > { %p337_p12 = scmp.ne.s32.totalorder %s481_s26, %s336_s6  ;;  %s341_s14 = sshll.u32 %s403_s12, 4  ;;  %s342_s14 = int_to_ptr.vmem [resolvable:$false] %s341_s14 }
  0x1d   : > { %s343_s15 = scalar_lea.vmem %s342_s14, 256  ;;  %p344_p11 = scmp.lt.s32.totalorder %s481_s26, %s342_s14 }
  0x1e   : > { %p339_p0 = pnand %p337_p12, %p323_p13  ;;  %p345_p2 = scmp.lt.s32.totalorder %s343_s15, %s336_s6 }
  0x20   : > { %p340_p10 = pneg %p339_p0  ;;  %p346_p3 = por %p345_p2, %p344_p11 }
  0x22   : > { %p347_p4 = pnand %p346_p3, %p340_p10 }
  0x24   : > { %350 = shalt.err (!%p347_p4)
}
  0x25   : > { %268 = dma.hbm_to_vmem [thread:$0]  (!%p477_p9), %s473_s24, 128, %s481_s26, %s99_s28  }
  0x26   : > { %p552_p1 = scmp.lt.s32.totalorder %s401_s11, 3  ;;  %p553_p5 = scmp.ge.s32.totalorder %s401_s11, 1 }
  0x28   : > { %p116_p13 = pnand %p553_p5, %p552_p1 }
  0x29   : > { %s121_s16 = sand.u32 (!%p116_p13), 1, %s385_s7  }
  0x2a   : > { %119 = sbr.rel (%p116_p13) target bundleno = 320 (0x140), region = 24  ;;  %s259_s19 = sshll.u32 (!%p116_p13), %s121_s16, 3 }
  0x2b   : > { %s122_s20 = scalar_lea.sflag (!%p116_p13), [#allocation5], %s121_s16  ;;  %s125_s21 = scalar_lea.vmem (!%p116_p13), [#allocation4], %s259_s19 }
  0x31   : > { %376 = dma.done.wait (%p460_p7), %s122_s20, 128  }
  0x32   : > { %378 = vsyncadd (%p460_p7), %s122_s20, 4294967168  ;;  %vm151_vm0 = vcmask 7168   ;;  %v404_v0 = vmov 0.0   ;;  %v154_v1 = vld [vmem:[%s125_s21] sm:$0xff]  ;;  %v405_v2 = vmov -inf   ;;  %s406_s17 = smov 1  }
  0x33   : > { %153 = vst.msk [vmem:[#allocation3] sm:$0xff] %vm151_vm0, %v404_v0  ;;  %162 = vadd.xlane.f32.xlu0 %v154_v1  ;;  %152 = vst.msk [vmem:[#allocation2] sm:$0xff] %vm151_vm0, %v405_v2  ;;  %p143_p7 = scmp.lt.s32.totalorder %s393_s9, 1  ;;  %vm176_vm1 = vcmask 15360  }
  0x35   : > { %s562_s9 = smov (!%p143_p7, %s393_s9), 1 }
  0x36   : > { %s260_s22 = sshll.u32 %s562_s9, 3 }
  0x37   : > { %156 = vmax.xlane.f32.xlu0 %v154_v1  ;;  %s146_s25 = scalar_lea.vmem %s548_s1, %s260_s22 }
  0x3a   : > { %v161_v3 = vld [vmem:[#allocation3] sm:$0xff]  ;;  %v155_v6 = vld [vmem:[#allocation2] sm:$0xff] }
  0xc0   : > { %v163_v4 = vpop.xlane.xlu0 %162 }
  0xc1   : > { %v164_v5 = vadd.f32 %v163_v4, %v161_v3 }
  0xc3   : > { %165 = vst.msk [vmem:[#allocation3] sm:$0xff] %vm151_vm0, %v164_v5 }
  0xc4   : > { %v157_v7 = vpop.xlane.xlu0 %156 }
  0xc5   : > { %v158_v8 = vmax.f32 %v155_v6, %v157_v7 }
  0xc7   : > { %160 = vst.msk [vmem:[#allocation2] sm:$0xff] %vm151_vm0, %v158_v8 }
  0xca   : > { %v170_v9 = vld [vmem:[#allocation3] sm:$0xff] }
  0xcb   : > { %172 = vrot.lane.b32.xlu1 %v170_v9, %s406_s17 }
  0xce   : > { %v169_v10 = vld [vmem:[#allocation2] sm:$0xff] }
 0x13d   : > { %v173_v11 = vpop.permute.xlu1 %172 }
 0x13e   : > { %v175_v12 = vsel %vm151_vm0, %v169_v10, %v173_v11 }
 0x13f   : > { %177 = vst.msk [vmem:[%s146_s25] sm:$0xff] %vm176_vm1, %v175_v12 }
 0x140 PF: > { %s14_s11 = sadd.s32 1, %s401_s11   ;;  %s554_s6 = smov %s385_s7 }
 0x141   : > { %p11_p9 = scmp.ge.s32.totalorder %s14_s11, 4   ;;  %s555_s7 = smov %s389_s8 }
 0x142   : > { %s556_s8 = smov %s466_s18  ;;  %s557_s9 = smov %s397_s10 }
 0x143   : > { %s558_s10 = smov %s560_s13  ;;  %13 = sbr.rel (!%p11_p9) target bundleno = 4 (0x4), region = 72 }
 0x14a   :  { %197 = vsyncpa [#allocation5], 1 }
 0x14b   :  { %199 = vsyncpa [#allocation5 + $0x1], 1 }

</bundles_post_ra>
